<compile_context>
chip_gen: v5e
topology: v5e:2x2
jax: 0.10.0
libtpu: 0.0.40
codegen_flags: <defaults>
</compile_context>

<pallas_src>
import functools
import math

import jax
import jax.numpy as jnp
from jax.experimental import pallas as pl
from jax.experimental.pallas import tpu as pltpu

_LANE = 128


def _round_up(n, m):
    return ((n + m - 1) // m) * m


# --------------------------- capability / device probes ---------------------------

@functools.lru_cache(maxsize=1)
def _vmem_capacity_bytes():
    """Physical VMEM per TensorCore (64 MiB on v7x, 128 MiB on v5e/v6e)."""
    try:
        return int(pltpu.get_tpu_info().vmem_capacity_bytes)
    except Exception:
        return 64 * 1024 * 1024  # conservative: safe on every generation


@functools.lru_cache(maxsize=1)
def _buffered_single_supported():
    """One-time probe: does this jax/Mosaic accept pipeline_mode=pl.Buffered(1)?"""
    if not hasattr(pl, "Buffered"):
        return False
    try:
        spec = pl.BlockSpec((8, _LANE), lambda i: (0, 0), pipeline_mode=pl.Buffered(1))
    except Exception:
        return False

    def _probe_kernel(a_ref, o_ref):
        o_ref[...] = a_ref[...] * 2.0

    try:
        fn = pl.pallas_call(
            _probe_kernel,
            out_shape=jax.ShapeDtypeStruct((8, _LANE), jnp.float32),
            grid_spec=pltpu.PrefetchScalarGridSpec(
                num_scalar_prefetch=0,
                grid=(1,),
                in_specs=[spec],
                out_specs=pl.BlockSpec((8, _LANE), lambda i: (0, 0)),
            ),
        )
        jax.jit(fn).lower(jnp.zeros((8, _LANE), jnp.float32)).compile()
        return True
    except Exception:
        return False


# --------------------------------- kernel body ---------------------------------

def _make_kernel(depth, block_depth, has_output):
    """Fused: input Linear+ReLU, (depth-1) residual blocks, optional output Linear."""

    def kernel(*refs):
        out_ref = refs[-1]
        idx = 0
        x = refs[idx][...]  # bf16 activations tile [tile_m, F_pad]
        idx += 1

        def linear_f32(h_bf16, w_ref, b_ref):
            # bf16 x bf16 -> f32 accumulate on the MXU, bias add in f32.
            return (
                jnp.dot(h_bf16, w_ref[...], preferred_element_type=jnp.float32)
                + b_ref[...]
            )

        # input layer: Linear + ReLU, carry h in bf16 between layers
        h = jnp.maximum(linear_f32(x, refs[idx], refs[idx + 1]), 0.0).astype(
            jnp.bfloat16
        )
        idx += 2

        # residual blocks (residual kept in bf16)
        for _ in range(depth - 1):
            r = h
            for _ in range(block_depth):
                h = jnp.maximum(
                    linear_f32(h, refs[idx], refs[idx + 1]), 0.0
                ).astype(jnp.bfloat16)
                idx += 2
            h = h + r

        # optional output projection (no activation), kept f32
        if has_output:
            h = linear_f32(h, refs[idx], refs[idx + 1])
            idx += 2

        out_ref[...] = h.astype(out_ref.dtype)

    return kernel


# ------------------------------ host-side wrapper ------------------------------

def prepare_params(params, n_features):
    """One-time param prep (hoist out of the hot loop): cast weights to bf16,
    biases to f32, zero-pad the first-layer rows and last-layer cols to lane
    width (zero padding leaves the math unchanged)."""
    F_pad = _round_up(n_features, _LANE)
    out_dim = params[-1][0].shape[1]
    out_pad = _round_up(out_dim, _LANE)
    n_layers = len(params)
    kparams = []
    for li, (w, b) in enumerate(params):
        w = w.astype(jnp.bfloat16)
        b = b.astype(jnp.float32)
        if li == 0 and F_pad != n_features:
            w = jnp.pad(w, ((0, F_pad - n_features), (0, 0)))
        if li == n_layers - 1 and out_pad != out_dim:
            w = jnp.pad(w, ((0, 0), (0, out_pad - out_dim)))
            b = jnp.pad(b, ((0, 0), (0, out_pad - out_dim)))
        kparams.append((w, b))
    return kparams


def _choose_tile_m(B, F_pad, width, out_pad, w_bytes, vmem_cap, single_buffer):
    """Largest batch tile that fits the VMEM budget, capped so the parallel grid
    keeps >= 2 steps (both v7x TensorCores busy) when the batch allows."""
    budget = vmem_cap * 3 // 4
    wf = 1 if single_buffer else 2
    per_row = (
        2 * (F_pad * 2 + out_pad * 4)          # double-buffered in/out tiles
        + 3 * width * 2                        # live bf16 activations (h, r, tmp)
        + max(width, out_pad) * 4              # one f32 accumulator tile
    )
    tile = 128
    for cand in (1024, 512, 256, 128):
        if wf * w_bytes + cand * per_row <= budget:
            tile = cand
            break
    if B > 128:
        tile = min(tile, max(_LANE, _round_up(-(-B // 2), _LANE)))
    return tile


@functools.partial(
    jax.jit,
    static_argnames=(
        "depth", "block_depth", "has_output", "tile_m", "out_dim",
        "single_buffer", "vmem_cap",
    ),
)
def _forward_jit(x, kparams, *, depth, block_depth, has_output, tile_m, out_dim,
                 single_buffer, vmem_cap):
    B, F = x.shape
    F_pad = kparams[0][0].shape[0]
    width = kparams[0][0].shape[1]
    out_pad = kparams[-1][0].shape[1]
    n_layers = len(kparams)
    assert n_layers == 1 + (depth - 1) * block_depth + (1 if has_output else 0)

    B_pad = pl.cdiv(B, tile_m) * tile_m
    grid = (B_pad // tile_m,)

    # single fused pad (batch rows + feature lanes) on the bf16-cast input
    x_p = jnp.pad(x.astype(jnp.bfloat16), ((0, B_pad - B), (0, F_pad - F)))

    flat_args = [x_p]
    in_specs = [pl.BlockSpec((tile_m, F_pad), lambda i: (i, 0))]
    for (w, b) in kparams:
        flat_args += [w, b]
        if single_buffer:
            # Constant index_map -> no pipelining benefit; single-buffer halves
            # resident weight VMEM (matters under v7x's 64 MiB/TC).
            in_specs.append(
                pl.BlockSpec(w.shape, lambda i: (0, 0), pipeline_mode=pl.Buffered(1))
            )
            in_specs.append(
                pl.BlockSpec(b.shape, lambda i: (0, 0), pipeline_mode=pl.Buffered(1))
            )
        else:
            in_specs.append(pl.BlockSpec(w.shape, lambda i: (0, 0)))
            in_specs.append(pl.BlockSpec(b.shape, lambda i: (0, 0)))

    out_spec = pl.BlockSpec((tile_m, out_pad), lambda i: (i, 0))
    out_shape = jax.ShapeDtypeStruct((B_pad, out_pad), jnp.float32)

    # VMEM budget: weights (x1 if single-buffered, else x2) + double-buffered IO
    # tiles + live bf16 activations + one f32 accumulator tile. Clamp to device VMEM.
    w_bytes = sum(
        w.size * w.dtype.itemsize + b.size * b.dtype.itemsize for (w, b) in kparams
    )
    io_bytes = tile_m * F_pad * 2 + tile_m * out_pad * 4
    act_bytes = 3 * tile_m * width * 2 + tile_m * max(width, out_pad) * 4
    wf = 1 if single_buffer else 2
    needed = wf * w_bytes + 2 * io_bytes + act_bytes
    vmem_limit = int(min(max(needed * 3 // 2, 32 * 1024 * 1024), vmem_cap))

    flops = 2 * B_pad * sum(w.shape[0] * w.shape[1] for (w, _) in kparams)
    bytes_accessed = x_p.size * 2 + B_pad * out_pad * 4 + w_bytes
    cost = pl.CostEstimate(
        flops=flops, transcendentals=0, bytes_accessed=bytes_accessed
    )

    out = pl.pallas_call(
        _make_kernel(depth, block_depth, has_output),
        out_shape=out_shape,
        grid_spec=pltpu.PrefetchScalarGridSpec(
            num_scalar_prefetch=0,
            grid=grid,
            in_specs=in_specs,
            out_specs=out_spec,
        ),
        compiler_params=pltpu.CompilerParams(
            dimension_semantics=("parallel",),
            vmem_limit_bytes=vmem_limit,
        ),
        cost_estimate=cost,
    )(*flat_args)

    return out[:B, :out_dim]


def residual_layers_pallas(x, kparams, *, depth, block_depth, output, tile_m=None):
    """x: [B, n_features] f32; kparams: output of prepare_params()."""
    width = kparams[0][0].shape[1]
    assert width % _LANE == 0, "hidden width must be a multiple of 128"
    has_output = bool(output)
    out_dim = int(output) if has_output else int(width)

    single_buffer = _buffered_single_supported()
    vmem_cap = _vmem_capacity_bytes()
    if tile_m is None:
        F_pad = kparams[0][0].shape[0]
        out_pad = kparams[-1][0].shape[1]
        w_bytes = sum(
            w.size * w.dtype.itemsize + b.size * b.dtype.itemsize
            for (w, b) in kparams
        )
        tile_m = _choose_tile_m(
            x.shape[0], F_pad, width, out_pad, w_bytes, vmem_cap, single_buffer
        )

    return _forward_jit(
        x, kparams,
        depth=depth, block_depth=block_depth, has_output=has_output,
        tile_m=int(tile_m), out_dim=out_dim,
        single_buffer=bool(single_buffer), vmem_cap=int(vmem_cap),
    )


# ---------------- parameter init (matches torch defaults in the spec) ----------------

def _xavier_uniform_relu(key, fan_in, fan_out):
    # torch.nn.init.xavier_uniform_ with gain = calculate_gain('relu') = sqrt(2)
    gain = math.sqrt(2.0)
    bound = gain * math.sqrt(6.0 / (fan_in + fan_out))
    # stored as [in, out] (pre-transposed relative to torch's [out, in])
    return jax.random.uniform(
        key, (fan_in, fan_out), dtype=jnp.float32, minval=-bound, maxval=bound
    )


def _torch_linear_bias(key, fan_in, fan_out):
    # torch Linear default bias init: U(-1/sqrt(fan_in), 1/sqrt(fan_in)); kept as [1, out]
    bound = 1.0 / math.sqrt(fan_in)
    return jax.random.uniform(
        key, (1, fan_out), dtype=jnp.float32, minval=-bound, maxval=bound
    )


def init_residual_layers_params(key, n_features, width, depth, block_depth, output):
    params = []
    n_linears = 1 + (depth - 1) * block_depth + (1 if output else 0)
    keys = jax.random.split(key, 2 * n_linears)
    ki = iter(range(len(keys)))

    params.append(
        (_xavier_uniform_relu(keys[next(ki)], n_features, width),
         _torch_linear_bias(keys[next(ki)], n_features, width))
    )
    for _ in range(depth - 1):
        for _ in range(block_depth):
            params.append(
                (_xavier_uniform_relu(keys[next(ki)], width, width),
                 _torch_linear_bias(keys[next(ki)], width, width))
            )
    if output:
        params.append(
            (_xavier_uniform_relu(keys[next(ki)], width, output),
             _torch_linear_bias(keys[next(ki)], width, output))
        )
    return params


def residual_layers_ref(x, params, *, depth, block_depth, output):
    """Pure-JAX reference matching the kernel's bf16-carry / f32-accumulate math."""

    def lin(h_bf16, w, b):
        return (
            jnp.dot(h_bf16, w.astype(jnp.bfloat16),
                    preferred_element_type=jnp.float32)
            + b.astype(jnp.float32)
        )

    idx = 0
    w, b = params[idx]; idx += 1
    h = jnp.maximum(lin(x.astype(jnp.bfloat16), w, b), 0.0).astype(jnp.bfloat16)
    for _ in range(depth - 1):
        r = h
        for _ in range(block_depth):
            w, b = params[idx]; idx += 1
            h = jnp.maximum(lin(h, w, b), 0.0).astype(jnp.bfloat16)
        h = h + r
    if output:
        w, b = params[idx]; idx += 1
        h = lin(h, w, b)
    return h.astype(jnp.float32)


# ------------------------------------- main -------------------------------------

if __name__ == "__main__":
    key = jax.random.PRNGKey(0)
    kx, kp_a, kp_b = jax.random.split(key, 3)

    # Config A: defaults-consistent (depth=2, block_depth=1, no output head).
    B, N_FEATURES, WIDTH, DEPTH, BLOCK_DEPTH, OUTPUT = 256, 32, 128, 2, 1, 0
    x = jax.random.normal(kx, (B, N_FEATURES), dtype=jnp.float32)
    params = init_residual_layers_params(kp_a, N_FEATURES, WIDTH, DEPTH, BLOCK_DEPTH, OUTPUT)
    kparams = prepare_params(params, N_FEATURES)   # one-time weight prep (hoisted)

    y = residual_layers_pallas(
        x, kparams, depth=DEPTH, block_depth=BLOCK_DEPTH, output=OUTPUT
    )
    y = jax.block_until_ready(y)
    y_ref = residual_layers_ref(x, params, depth=DEPTH, block_depth=BLOCK_DEPTH, output=OUTPUT)
    assert y.shape == (B, WIDTH), y.shape
    assert jnp.allclose(y, y_ref, atol=2e-2, rtol=2e-2), "config A mismatch vs reference"

    # Config B: deeper net with an output head; exercises feature/output padding
    # and the ragged-batch path.
    B2, F2, W2, D2, BD2, OUT2 = 200, 20, 128, 3, 2, 16
    x2 = jax.random.normal(jax.random.fold_in(kx, 1), (B2, F2), dtype=jnp.float32)
    params2 = init_residual_layers_params(kp_b, F2, W2, D2, BD2, OUT2)
    kparams2 = prepare_params(params2, F2)

    y2 = jax.block_until_ready(
        residual_layers_pallas(x2, kparams2, depth=D2, block_depth=BD2, output=OUT2)
    )
    y2_ref = residual_layers_ref(x2, params2, depth=D2, block_depth=BD2, output=OUT2)
    assert y2.shape == (B2, OUT2), y2.shape
    assert jnp.allclose(y2, y2_ref, atol=2e-2, rtol=2e-2), "config B mismatch vs reference"

    print("KERNEL_OK")
</pallas_src>

<mosaic_0001>
module attributes {stable_mosaic.version = 11 : i64} {
  func.func @kernel(%arg0: i32, %arg1: memref<128x128xbf16, #tpu.memory_space<vmem>>, %arg2: memref<128x128xbf16, #tpu.memory_space<vmem>>, %arg3: memref<1x128xf32, #tpu.memory_space<vmem>>, %arg4: memref<128x128xbf16, #tpu.memory_space<vmem>>, %arg5: memref<1x128xf32, #tpu.memory_space<vmem>>, %arg6: memref<128x128xf32, #tpu.memory_space<vmem>>) attributes {dimension_semantics = [#tpu.dimension_semantics<parallel>], iteration_bounds = array<i64: 2>, scalar_prefetch = 0 : i64, scratch_operands = 0 : i64, tpu.core_type = #tpu.core_type<tc>, window_params = [{transform_indices = @transform_0, window_bounds = array<i64: 128, 128>}, {pipeline_mode = #tpu.pipeline_mode<synchronous>, transform_indices = @transform_1, window_bounds = array<i64: 128, 128>}, {pipeline_mode = #tpu.pipeline_mode<synchronous>, transform_indices = @transform_2, window_bounds = array<i64: 1, 128>}, {pipeline_mode = #tpu.pipeline_mode<synchronous>, transform_indices = @transform_3, window_bounds = array<i64: 128, 128>}, {pipeline_mode = #tpu.pipeline_mode<synchronous>, transform_indices = @transform_4, window_bounds = array<i64: 1, 128>}, {transform_indices = @transform_5, window_bounds = array<i64: 128, 128>}]} {
    %c0 = arith.constant 0 : index
    %c0_0 = arith.constant 0 : index
    %0 = vector.load %arg1[%c0, %c0_0] : memref<128x128xbf16, #tpu.memory_space<vmem>>, vector<128x128xbf16>
    %c0_1 = arith.constant 0 : index
    %c0_2 = arith.constant 0 : index
    %1 = vector.load %arg2[%c0_1, %c0_2] : memref<128x128xbf16, #tpu.memory_space<vmem>>, vector<128x128xbf16>
    %cst = arith.constant dense<0.000000e+00> : vector<128x128xf32>
    %2 = tpu.matmul %0, %1, %cst {dimension_numbers = #tpu.dot_dimension_numbers<[1], [0], [0], [1], [0, 0, 1, 1], [], []>} : vector<128x128xbf16>, vector<128x128xbf16>, vector<128x128xf32> -> vector<128x128xf32>
    %c0_3 = arith.constant 0 : index
    %c0_4 = arith.constant 0 : index
    %3 = vector.load %arg3[%c0_3, %c0_4] : memref<1x128xf32, #tpu.memory_space<vmem>>, vector<1x128xf32>
    %4 = vector.broadcast %3 : vector<1x128xf32> to vector<128x128xf32>
    %5 = arith.addf %2, %4 : vector<128x128xf32>
    %cst_5 = arith.constant 0.000000e+00 : f32
    %6 = vector.broadcast %cst_5 : f32 to vector<128x128xf32>
    %7 = arith.maximumf %5, %6 : vector<128x128xf32>
    %8 = arith.truncf %7 : vector<128x128xf32> to vector<128x128xbf16>
    %c0_6 = arith.constant 0 : index
    %c0_7 = arith.constant 0 : index
    %9 = vector.load %arg4[%c0_6, %c0_7] : memref<128x128xbf16, #tpu.memory_space<vmem>>, vector<128x128xbf16>
    %cst_8 = arith.constant dense<0.000000e+00> : vector<128x128xf32>
    %10 = tpu.matmul %8, %9, %cst_8 {dimension_numbers = #tpu.dot_dimension_numbers<[1], [0], [0], [1], [0, 0, 1, 1], [], []>} : vector<128x128xbf16>, vector<128x128xbf16>, vector<128x128xf32> -> vector<128x128xf32>
    %c0_9 = arith.constant 0 : index
    %c0_10 = arith.constant 0 : index
    %11 = vector.load %arg5[%c0_9, %c0_10] : memref<1x128xf32, #tpu.memory_space<vmem>>, vector<1x128xf32>
    %12 = vector.broadcast %11 : vector<1x128xf32> to vector<128x128xf32>
    %13 = arith.addf %10, %12 : vector<128x128xf32>
    %cst_11 = arith.constant 0.000000e+00 : f32
    %14 = vector.broadcast %cst_11 : f32 to vector<128x128xf32>
    %15 = arith.maximumf %13, %14 : vector<128x128xf32>
    %16 = arith.truncf %15 : vector<128x128xf32> to vector<128x128xbf16>
    %17 = arith.addf %16, %8 : vector<128x128xbf16>
    %18 = arith.extf %17 : vector<128x128xbf16> to vector<128x128xf32>
    %c0_12 = arith.constant 0 : index
    %c0_13 = arith.constant 0 : index
    %19 = vector.load %arg6[%c0_12, %c0_13] : memref<128x128xf32, #tpu.memory_space<vmem>>, vector<128x128xf32>
    tpu.vector_store %arg6[%c0_12, %c0_13], %18 {strides = array<i32>} : memref<128x128xf32, #tpu.memory_space<vmem>>, vector<128x128xf32>,
    return
  }
  func.func @transform_0(%arg0: i32) -> (i32, i32) {
    %c0_i32 = arith.constant 0 : i32
    %c0_i32_0 = arith.constant 0 : i32
    return %arg0, %c0_i32 : i32, i32
  }
  func.func @transform_1(%arg0: i32) -> (i32, i32) {
    %c0_i32 = arith.constant 0 : i32
    %c0_i32_0 = arith.constant 0 : i32
    %c0_i32_1 = arith.constant 0 : i32
    return %c0_i32, %c0_i32_0 : i32, i32
  }
  func.func @transform_2(%arg0: i32) -> (i32, i32) {
    %c0_i32 = arith.constant 0 : i32
    %c0_i32_0 = arith.constant 0 : i32
    %c0_i32_1 = arith.constant 0 : i32
    return %c0_i32, %c0_i32_0 : i32, i32
  }
  func.func @transform_3(%arg0: i32) -> (i32, i32) {
    %c0_i32 = arith.constant 0 : i32
    %c0_i32_0 = arith.constant 0 : i32
    %c0_i32_1 = arith.constant 0 : i32
    return %c0_i32, %c0_i32_0 : i32, i32
  }
  func.func @transform_4(%arg0: i32) -> (i32, i32) {
    %c0_i32 = arith.constant 0 : i32
    %c0_i32_0 = arith.constant 0 : i32
    %c0_i32_1 = arith.constant 0 : i32
    return %c0_i32, %c0_i32_0 : i32, i32
  }
  func.func @transform_5(%arg0: i32) -> (i32, i32) {
    %c0_i32 = arith.constant 0 : i32
    %c0_i32_0 = arith.constant 0 : i32
    return %arg0, %c0_i32 : i32, i32
  }
}

</mosaic_0001>

<bundles_post_ra>
// kernel: _forward_jit.1
= control target key start
LH: loop header
LB: loop body
LE: loop exit
PB: predicated region body
PF: predicated region fallthrough
CT: control target
= control target key end

     0   :  { %10 = vsyncpa [#allocation3], 0  ;;  %s1359_s0 = inlined_call_operand.vmem [shape: bf16[256,128], index: 0, kind: input, shape index: {}]   ;;  %s1360_s1 = inlined_call_operand.vmem [shape: bf16[128,128], index: 1, kind: input, shape index: {}]   ;;  %s1361_s2 = inlined_call_operand.vmem [shape: f32[1,128], index: 2, kind: input, shape index: {}]   ;;  %s1362_s3 = inlined_call_operand.vmem [shape: bf16[128,128], index: 3, kind: input, shape index: {}]   ;;  %s1363_s4 = inlined_call_operand.vmem [shape: f32[1,128], index: 4, kind: input, shape index: {}]   ;;  %s1364_s5 = inlined_call_operand.hbm [shape: f32[256,128], index: 5, kind: output, shape index: {}]  }
   0x1   :  { %12 = vsyncpa [#allocation3 + $0x1], 0  ;;  %s1098_s18 = smov 0   ;;  %s1100_s19 = smov 0  }
   0x2   :  { %s1102_s20 = smov 0   ;;  %s1104_s21 = smov 0  }
   0x3 LB: > { %s1119_s22 = sadd.s32 4294967295, %s1064_s21   ;;  %s810_s23 = sadd.s32 4294967294, %s1064_s21   ;;  %s1064_s21 = sphi %s1104_s21, %s1370_s21   ;;  %s1060_s20 = sphi %s1102_s20, %s1369_s20   ;;  %s1056_s19 = sphi %s1100_s19, %s1368_s19   ;;  %s1052_s18 = sphi %s1098_s18, %s1367_s18  }
   0x4   : > { %s1123_s24 = sadd.s32 1, %s1064_s21   ;;  %s135_s25 = sadd.s32 1, %s1060_s20 }
   0x5   : > { %s132_s26 = ssub.s32 %s1064_s21, %s1123_s24  ;;  %p145_p0 = scmp.ne.s32.totalorder %s1060_s20, %s1056_s19 }
   0x6   : > { %p133_p1 = scmp.eq.s32.totalorder %s132_s26, 0  ;;  %p146_p2 = scmp.eq.s32.totalorder %s1119_s22, 1 }
   0x7   : > { %p151_p3 = scmp.ne.s32.totalorder %s1056_s19, %s1052_s18  ;;  %p152_p4 = scmp.eq.s32.totalorder %s810_s23, 1 }
   0x8   : > { %s1134_s27 = scalar_select %p133_p1, %s1060_s20, %s135_s25  }
   0x9   : > { %p1136_p5 = por %p146_p2, %p145_p0  ;;  %p1140_p6 = por %p152_p4, %p151_p3 }
   0xa   : > { %p813_p7 = scmp.ge.s32.totalorder %s1064_s21, 1  ;;  %p191_p8 = scmp.lt.s32.totalorder %s1064_s21, 3 }
   0xc   : > { %p192_p9 = pnand %p813_p7, %p191_p8 }
   0xd   : > { %s815_s13 = sshll.u32 (!%p192_p9), %s1119_s22, 4  ;;  %s216_s14 = sand.u32 (!%p192_p9), 1, %s1056_s19  }
   0xe   : > { %195 = sbr.rel (%p192_p9) target bundleno = 407 (0x197), region = 40  ;;  %p220_p10 = scmp.lt.s32.totalorder (!%p192_p9), %s815_s13, 31 }
   0xf   : > { %s814_s15 = sshll.u32 (!%p192_p9), %s216_s14, 7  ;;  %s942_s17 = sshll.u32 (!%p192_p9), %s1119_s22, 7 }
  0x10   : > { %s1280_s16 = scalar_lea.vmem (!%p192_p9), [#allocation2], %s814_s15  ;;  %s733_s22 = scalar_lea.sflag (!%p192_p9), [#allocation3], %s216_s14 }
  0x11   : > { %s745_s30 = sshll.u32 (!%p192_p9), %s1280_s16, 4  ;;  %s1022_s11 = scalar_lea.hbm (!%p192_p9), %s1364_s5, 256  ;;  %s746_s30 = int_to_ptr.vmem [resolvable:$true] %s745_s30 }
  0x13   : > { %v933_v0 = vld [vmem:[%s1360_s1 + $0x38] sm:$0xff]  ;;  %v932_v1 = vld [vmem:[%s1360_s1 + $0x30] sm:$0xff]  ;;  %v931_v2 = vld [vmem:[%s1360_s1 + $0x28] sm:$0xff]  ;;  %s1372_s13 = smov (!%p220_p10, %s815_s13), 31 }
  0x14   : > { %358 = vmatpush.bf16.msra.mxu0 %v933_v0  ;;  %943 = vmatpush.bf16.msra.mxu2 %v933_v0  ;;  %v930_v3 = vld [vmem:[%s1360_s1 + $0x20] sm:$0xff]  ;;  %v929_v4 = vld [vmem:[%s1360_s1 + $0x18] sm:$0xff]  ;;  %v928_v5 = vld [vmem:[%s1360_s1 + $0x10] sm:$0xff]  ;;  %s816_s26 = sshll.u32 %s1372_s13, 2 }
  0x15   : > { %v927_v6 = vld [vmem:[%s1360_s1 + $0x8] sm:$0xff]  ;;  %v926_v7 = vld [vmem:[%s1360_s1] sm:$0xff]  ;;  %s223_s9 = scalar_lea.vmem %s1359_s0, %s816_s26  ;;  %v941_v12 = vld [vmem:[%s1362_s3 + $0x38] sm:$0xff]  ;;  %s744_s26 = scalar_lea.hbm %s1364_s5, %s942_s17 }
  0x16   : > { %v918_v8 = vld [vmem:[%s223_s9] sm:$0xff]  ;;  %v919_v10 = vld [vmem:[%s223_s9 + $0x8] sm:$0xff]  ;;  %555 = vmatpush.bf16.msra.mxu1 %v941_v12  ;;  %v940_v13 = vld [vmem:[%s1362_s3 + $0x30] sm:$0xff]  ;;  %951 = vmatpush.bf16.msra.mxu3 %v941_v12  ;;  %s747_s6 = sshll.u32 %s744_s26, 4  ;;  %s748_s6 = int_to_ptr.hbm [resolvable:$true] %s747_s6 }
  0x17   : > { %v922_v9 = vld [vmem:[%s223_s9 + $0x20] sm:$0xff]  ;;  %v923_v11 = vld [vmem:[%s223_s9 + $0x28] sm:$0xff]  ;;  %v920_v15 = vld [vmem:[%s223_s9 + $0x10] sm:$0xff]  ;;  %s1016_s7 = sshra.s32 %s748_s6, 4  ;;  %s1017_s7 = int_to_ptr.hbm [resolvable:$true] %s1016_s7 }
  0x18   : > { %359 = vmatpush.bf16.msra.mxu0 %v932_v1  ;;  %944 = vmatpush.bf16.msra.mxu2 %v932_v1  ;;  %v939_v14 = vld [vmem:[%s1362_s3 + $0x28] sm:$0xff]  ;;  %v924_v16 = vld [vmem:[%s223_s9 + $0x30] sm:$0xff]  ;;  %v921_v17 = vld [vmem:[%s223_s9 + $0x18] sm:$0xff]  ;;  %s1018_s8 = scalar_lea.hbm %s1017_s7, 128  ;;  %p1023_p0 = scmp.lt.s32.totalorder %s1017_s7, %s1364_s5 }
  0x19   : > { %v925_v18 = vld [vmem:[%s223_s9 + $0x38] sm:$0xff]  ;;  %v938_v19 = vld [vmem:[%s1362_s3 + $0x20] sm:$0xff]  ;;  %v936_v21 = vld [vmem:[%s1362_s3 + $0x10] sm:$0xff]  ;;  %p1019_p11 = scmp.ne.s32.totalorder %s1017_s7, %s1018_s8  ;;  %p1024_p1 = scmp.lt.s32.totalorder %s1022_s11, %s1018_s8 }
  0x1a   : > { %556 = vmatpush.bf16.msra.mxu1 %v940_v13  ;;  %952 = vmatpush.bf16.msra.mxu3 %v940_v13  ;;  %v937_v20 = vld [vmem:[%s1362_s3 + $0x18] sm:$0xff]  ;;  %v935_v22 = vld [vmem:[%s1362_s3 + $0x8] sm:$0xff]  ;;  %v934_v23 = vld [vmem:[%s1362_s3] sm:$0xff] }
  0x1b   : > { %v1201_v24 = vld [vmem:[%s1361_s2] ss:$0 sm:$0xff]  ;;  %p1020_p12 = pnand %p1019_p11, %p1136_p5  ;;  %p1025_p2 = por %p1024_p1, %p1023_p0 }
  0x1c   : > { %360 = vmatpush.bf16.msra.mxu0 %v931_v2  ;;  %945 = vmatpush.bf16.msra.mxu2 %v931_v2 }
  0x1d   : > { %p1021_p13 = pneg %p1020_p12 }
  0x1e   : > { %557 = vmatpush.bf16.msra.mxu1 %v939_v14  ;;  %953 = vmatpush.bf16.msra.mxu3 %v939_v14 }
  0x1f   : > { %p1026_p3 = pnand %p1025_p2, %p1021_p13 }
  0x20   : > { %361 = vmatpush.bf16.msra.mxu0 %v930_v3  ;;  %946 = vmatpush.bf16.msra.mxu2 %v930_v3 }
  0x22   : > { %558 = vmatpush.bf16.msra.mxu1 %v938_v19  ;;  %954 = vmatpush.bf16.msra.mxu3 %v938_v19 }
  0x24   : > { %362 = vmatpush.bf16.msra.mxu0 %v929_v4  ;;  %947 = vmatpush.bf16.msra.mxu2 %v929_v4 }
  0x26   : > { %559 = vmatpush.bf16.msra.mxu1 %v937_v20  ;;  %955 = vmatpush.bf16.msra.mxu3 %v937_v20 }
  0x28   : > { %363 = vmatpush.bf16.msra.mxu0 %v928_v5  ;;  %948 = vmatpush.bf16.msra.mxu2 %v928_v5 }
  0x2a   : > { %560 = vmatpush.bf16.msra.mxu1 %v936_v21  ;;  %956 = vmatpush.bf16.msra.mxu3 %v936_v21 }
  0x2c   : > { %364 = vmatpush.bf16.msra.mxu0 %v927_v6  ;;  %949 = vmatpush.bf16.msra.mxu2 %v927_v6 }
  0x2e   : > { %561 = vmatpush.bf16.msra.mxu1 %v935_v22  ;;  %957 = vmatpush.bf16.msra.mxu3 %v935_v22 }
  0x30   : > { %365 = vmatpush.bf16.msra.mxu0 %v926_v7  ;;  %950 = vmatpush.bf16.msra.mxu2 %v926_v7 }
  0x32   : > { %562 = vmatpush.bf16.msra.mxu1 %v934_v23  ;;  %958 = vmatpush.bf16.msra.mxu3 %v934_v23 }
  0x33   : > { %366 = vmatmul.bf16.vlgmr.msra.gmra.mxu0 %v918_v8  ;;  %386 = vmatmul.bf16.vlgmr.msra.gmra.mxu2 %v922_v9 }
  0x43   : > { %371 = vmatmul.bf16.gmra.mxu0 %v919_v10  ;;  %391 = vmatmul.bf16.gmra.mxu2 %v923_v11 }
  0x53   : > { %376 = vmatmul.bf16.gmra.mxu0 %v920_v15  ;;  %396 = vmatmul.bf16.gmra.mxu2 %v924_v16 }
  0x63   : > { %381 = vmatmul.bf16.gmra.mxu0 %v921_v17  ;;  %401 = vmatmul.bf16.gmra.mxu2 %v925_v18 }
  0xb0   : > { %v367_v25 = vpop.f32.mrf.mxu0 }
  0xb1   : > { %v368_v26 = vadd.f32 %v1201_v24, %v367_v25 }
  0xb3   : > { %v407_v27 = vmax.f32 %v368_v26, 0.0 }
  0xb5   : > { %v1204_v30 = vpack.c.bf16 %v407_v27, %v407_v27 }
  0xb6   : > { %v387_v28 = vpop.f32.mrf.mxu2 }
  0xb7   : > { %v388_v31 = vadd.f32 %v1201_v24, %v387_v28  ;;  %v475_v36 = vunpack.c.l.b16 %v1204_v30 }
  0xb8   : > { %v369_v29 = vpop.f32.mrf.mxu0 }
  0xb9   : > { %v370_v32 = vadd.f32 %v1201_v24, %v369_v29  ;;  %v415_v34 = vmax.f32 %v388_v31, 0.0 }
  0xbb   : > { %v408_v33 = vmax.f32 %v370_v32, 0.0  ;;  %v1213_v41 = vpack.c.bf16 %v415_v34, %v415_v34 }
  0xbd   : > { %v1208_v35 = vpack.c.bf16 %v408_v33, %v408_v33  ;;  %v483_v47 = vunpack.c.l.b16 %v1213_v41 }
  0xbe   : > { %v389_v37 = vpop.f32.mrf.mxu2 }
  0xbf   : > { %v390_v38 = vadd.f32 %v1201_v24, %v389_v37  ;;  %v476_v39 = vunpack.c.l.b16 %v1208_v35 }
  0xc0   : > { %v372_v40 = vpop.f32.mrf.mxu0 }
  0xc1   : > { %v416_v42 = vmax.f32 %v390_v38, 0.0  ;;  %v373_v43 = vadd.f32 %v1201_v24, %v372_v40  ;;  %v491_v44 = vpack.c.b16 %v476_v39, %v475_v36 }
  0xc3   : > { %v1216_v45 = vpack.c.bf16 %v416_v42, %v416_v42  ;;  %563 = vmatmul.bf16.vlgmr.msra.gmra.mxu1 %v491_v44  ;;  %v409_v46 = vmax.f32 %v373_v43, 0.0 }
  0xc5   : > { %v484_v48 = vunpack.c.l.b16 %v1216_v45  ;;  %v1220_v52 = vpack.c.bf16 %v409_v46, %v409_v46 }
  0xc6   : > { %v392_v49 = vpop.f32.mrf.mxu2 }
  0xc7   : > { %v495_v50 = vpack.c.b16 %v484_v48, %v483_v47  ;;  %v393_v53 = vadd.f32 %v1201_v24, %v392_v49  ;;  %v477_v58 = vunpack.c.l.b16 %v1220_v52 }
  0xc8   : > { %v374_v51 = vpop.f32.mrf.mxu0 }
  0xc9   : > { %v375_v54 = vadd.f32 %v1201_v24, %v374_v51  ;;  %583 = vmatmul.bf16.vlgmr.msra.gmra.mxu3 %v495_v50  ;;  %v417_v56 = vmax.f32 %v393_v53, 0.0 }
  0xcb   : > { %v410_v55 = vmax.f32 %v375_v54, 0.0  ;;  %v1229_v63 = vpack.c.bf16 %v417_v56, %v417_v56 }
  0xcd   : > { %v1224_v57 = vpack.c.bf16 %v410_v55, %v410_v55  ;;  %v485_v5 = vunpack.c.l.b16 %v1229_v63 }
  0xce   : > { %v394_v59 = vpop.f32.mrf.mxu2 }
  0xcf   : > { %v395_v60 = vadd.f32 %v1201_v24, %v394_v59  ;;  %v478_v61 = vunpack.c.l.b16 %v1224_v57 }
  0xd0   : > { %v377_v62 = vpop.f32.mrf.mxu0 }
  0xd1   : > { %v418_v0 = vmax.f32 %v395_v60, 0.0  ;;  %v378_v1 = vadd.f32 %v1201_v24, %v377_v62  ;;  %v492_v2 = vpack.c.b16 %v478_v61, %v477_v58  ;;  %v652_v60 = vunpack.c.l.bf16 %v1204_v30 }
  0xd3   : > { %v1232_v3 = vpack.c.bf16 %v418_v0, %v418_v0  ;;  %568 = vmatmul.bf16.gmra.mxu1 %v492_v2  ;;  %v411_v4 = vmax.f32 %v378_v1, 0.0 }
  0xd5   : > { %v486_v6 = vunpack.c.l.b16 %v1232_v3  ;;  %v1236_v10 = vpack.c.bf16 %v411_v4, %v411_v4 }
  0xd6   : > { %v397_v7 = vpop.f32.mrf.mxu2 }
  0xd7   : > { %v496_v8 = vpack.c.b16 %v486_v6, %v485_v5  ;;  %v398_v11 = vadd.f32 %v1201_v24, %v397_v7  ;;  %v479_v16 = vunpack.c.l.b16 %v1236_v10 }
  0xd8   : > { %v379_v9 = vpop.f32.mrf.mxu0 }
  0xd9   : > { %v380_v12 = vadd.f32 %v1201_v24, %v379_v9  ;;  %588 = vmatmul.bf16.gmra.mxu3 %v496_v8  ;;  %v419_v14 = vmax.f32 %v398_v11, 0.0  ;;  %v653_v9 = vunpack.c.l.bf16 %v1208_v35 }
  0xdb   : > { %v412_v13 = vmax.f32 %v380_v12, 0.0  ;;  %v1245_v21 = vpack.c.bf16 %v419_v14, %v419_v14 }
  0xdd   : > { %v1240_v15 = vpack.c.bf16 %v412_v13, %v412_v13  ;;  %v487_v28 = vunpack.c.l.b16 %v1245_v21 }
  0xde   : > { %v399_v17 = vpop.f32.mrf.mxu2 }
  0xdf   : > { %v400_v18 = vadd.f32 %v1201_v24, %v399_v17  ;;  %v480_v19 = vunpack.c.l.b16 %v1240_v15  ;;  %v660_v17 = vunpack.c.l.bf16 %v1213_v41 }
  0xe0   : > { %v382_v20 = vpop.f32.mrf.mxu0 }
  0xe1   : > { %v420_v22 = vmax.f32 %v400_v18, 0.0  ;;  %v383_v23 = vadd.f32 %v1201_v24, %v382_v20  ;;  %v493_v25 = vpack.c.b16 %v480_v19, %v479_v16 }
  0xe3   : > { %v1248_v26 = vpack.c.bf16 %v420_v22, %v420_v22  ;;  %573 = vmatmul.bf16.gmra.mxu1 %v493_v25  ;;  %v413_v27 = vmax.f32 %v383_v23, 0.0 }
  0xe5   : > { %v488_v29 = vunpack.c.l.b16 %v1248_v26  ;;  %v1252_v34 = vpack.c.bf16 %v413_v27, %v413_v27 }
  0xe6   : > { %v402_v31 = vpop.f32.mrf.mxu2 }
  0xe7   : > { %v497_v32 = vpack.c.b16 %v488_v29, %v487_v28  ;;  %v403_v36 = vadd.f32 %v1201_v24, %v402_v31  ;;  %v481_v42 = vunpack.c.l.b16 %v1252_v34  ;;  %v654_v28 = vunpack.c.l.bf16 %v1220_v52 }
  0xe8   : > { %v384_v33 = vpop.f32.mrf.mxu0 }
  0xe9   : > { %v385_v37 = vadd.f32 %v1201_v24, %v384_v33  ;;  %593 = vmatmul.bf16.gmra.mxu3 %v497_v32  ;;  %v421_v39 = vmax.f32 %v403_v36, 0.0 }
  0xeb   : > { %v414_v38 = vmax.f32 %v385_v37, 0.0  ;;  %v1261_v47 = vpack.c.bf16 %v421_v39, %v421_v39  ;;  %v661_v39 = vunpack.c.l.bf16 %v1216_v45 }
  0xed   : > { %v1256_v40 = vpack.c.bf16 %v414_v38, %v414_v38  ;;  %v489_v51 = vunpack.c.l.b16 %v1261_v47 }
  0xee   : > { %v404_v43 = vpop.f32.mrf.mxu2 }
  0xef   : > { %v405_v44 = vadd.f32 %v1201_v24, %v404_v43  ;;  %v482_v46 = vunpack.c.l.b16 %v1256_v40  ;;  %v1270_v24 = vld [vmem:[%s1363_s4] ss:$0 sm:$0xff] }
  0xf1   : > { %v422_v48 = vmax.f32 %v405_v44, 0.0  ;;  %v494_v49 = vpack.c.b16 %v482_v46, %v481_v42 }
  0xf3   : > { %v1263_v50 = vpack.c.bf16 %v422_v48, %v422_v48  ;;  %578 = vmatmul.bf16.gmra.mxu1 %v494_v49 }
  0xf5   : > { %v490_v53 = vunpack.c.l.b16 %v1263_v50 }
  0xf7   : > { %v498_v54 = vpack.c.b16 %v490_v53, %v489_v51  ;;  %v655_v53 = vunpack.c.l.bf16 %v1224_v57 }
  0xf9   : > { %598 = vmatmul.bf16.gmra.mxu3 %v498_v54 }
 0x140   : > { %v564_v55 = vpop.f32.mrf.mxu1 }
 0x141   : > { %v565_v56 = vadd.f32 %v1270_v24, %v564_v55 }
 0x143   : > { %v604_v58 = vmax.f32 %v565_v56, 0.0 }
 0x145   : > { %v620_v59 = vpack.c.bf16 %v604_v58, %v604_v58 }
 0x147   : > { %v636_v61 = vunpack.c.l.bf16 %v620_v59 }
 0x148   : > { %v566_v62 = vpop.f32.mrf.mxu1 }
 0x149   : > { %v668_v0 = vadd.f32 %v652_v60, %v636_v61  ;;  %v567_v1 = vadd.f32 %v1270_v24, %v566_v62  ;;  %v662_v62 = vunpack.c.l.bf16 %v1229_v63 }
 0x14b   : > { %v684_v2 = vpack.c.bf16 %v668_v0, %v668_v0  ;;  %v605_v4 = vmax.f32 %v567_v1, 0.0 }
 0x14c   : > { %v584_v5 = vpop.f32.mrf.mxu3 }
 0x14d   : > { %v700_v6 = vunpack.c.l.bf16 %v684_v2  ;;  %v621_v7 = vpack.c.bf16 %v605_v4, %v605_v4  ;;  %v585_v8 = vadd.f32 %v1270_v24, %v584_v5 }
 0x14f   : > { %716 = vst [vmem:[%s1280_s16] sm:$0xff] %v700_v6  ;;  %v637_v30 = vunpack.c.l.bf16 %v621_v7  ;;  %v612_v11 = vmax.f32 %v585_v8, 0.0  ;;  %v656_v8 = vunpack.c.l.bf16 %v1236_v10 }
 0x150   : > { %v569_v12 = vpop.f32.mrf.mxu1 }
 0x151   : > { %v669_v13 = vadd.f32 %v653_v9, %v637_v30  ;;  %v628_v14 = vpack.c.bf16 %v612_v11, %v612_v11  ;;  %v570_v16 = vadd.f32 %v1270_v24, %v569_v12 }
 0x153   : > { %v685_v18 = vpack.c.bf16 %v669_v13, %v669_v13  ;;  %v644_v19 = vunpack.c.l.bf16 %v628_v14  ;;  %v606_v20 = vmax.f32 %v570_v16, 0.0 }
 0x154   : > { %v586_v22 = vpop.f32.mrf.mxu3 }
 0x155   : > { %v701_v35 = vunpack.c.l.bf16 %v685_v18  ;;  %v676_v23 = vadd.f32 %v660_v17, %v644_v19  ;;  %v622_v25 = vpack.c.bf16 %v606_v20, %v606_v20  ;;  %v587_v27 = vadd.f32 %v1270_v24, %v586_v22 }
 0x156   : > { %v663_v17 = vunpack.c.l.bf16 %v1232_v3 }
 0x157   : > { %717 = vst [vmem:[%s1280_s16 + $0x8] sm:$0xff] %v701_v35  ;;  %v692_v29 = vpack.c.bf16 %v676_v23, %v676_v23  ;;  %v638_v31 = vunpack.c.l.bf16 %v622_v25  ;;  %v613_v32 = vmax.f32 %v587_v27, 0.0  ;;  %v657_v27 = vunpack.c.l.bf16 %v1240_v15 }
 0x158   : > { %v571_v33 = vpop.f32.mrf.mxu1 }
 0x159   : > { %v708_v36 = vunpack.c.l.bf16 %v692_v29  ;;  %v670_v41 = vadd.f32 %v654_v28, %v638_v31  ;;  %v629_v37 = vpack.c.bf16 %v613_v32, %v613_v32  ;;  %v572_v38 = vadd.f32 %v1270_v24, %v571_v33 }
 0x15b   : > { %724 = vst [vmem:[%s1280_s16 + $0x40] sm:$0xff] %v708_v36  ;;  %v686_v42 = vpack.c.bf16 %v670_v41, %v670_v41  ;;  %v645_v43 = vunpack.c.l.bf16 %v629_v37  ;;  %v607_v44 = vmax.f32 %v572_v38, 0.0  ;;  %v664_v37 = vunpack.c.l.bf16 %v1245_v21 }
 0x15c   : > { %v589_v46 = vpop.f32.mrf.mxu3 }
 0x15d   : > { %v702_v52 = vunpack.c.l.bf16 %v686_v42  ;;  %v677_v48 = vadd.f32 %v661_v39, %v645_v43  ;;  %v623_v49 = vpack.c.bf16 %v607_v44, %v607_v44  ;;  %v590_v51 = vadd.f32 %v1270_v24, %v589_v46 }
 0x15f   : > { %718 = vst [vmem:[%s1280_s16 + $0x10] sm:$0xff] %v702_v52  ;;  %v693_v54 = vpack.c.bf16 %v677_v48, %v677_v48  ;;  %v639_v55 = vunpack.c.l.bf16 %v623_v49  ;;  %v614_v56 = vmax.f32 %v590_v51, 0.0  ;;  %v658_v48 = vunpack.c.l.bf16 %v1252_v34 }
 0x160   : > { %v574_v58 = vpop.f32.mrf.mxu1 }
 0x161   : > { %v709_v45 = vunpack.c.l.bf16 %v693_v54  ;;  %v671_v59 = vadd.f32 %v655_v53, %v639_v55  ;;  %v630_v60 = vpack.c.bf16 %v614_v56, %v614_v56  ;;  %v575_v61 = vadd.f32 %v1270_v24, %v574_v58 }
 0x163   : > { %725 = vst [vmem:[%s1280_s16 + $0x48] sm:$0xff] %v709_v45  ;;  %v687_v0 = vpack.c.bf16 %v671_v59, %v671_v59  ;;  %v646_v1 = vunpack.c.l.bf16 %v630_v60  ;;  %v608_v2 = vmax.f32 %v575_v61, 0.0  ;;  %v665_v45 = vunpack.c.l.bf16 %v1248_v26 }
 0x164   : > { %v591_v4 = vpop.f32.mrf.mxu3 }
 0x165   : > { %v703_v57 = vunpack.c.l.bf16 %v687_v0  ;;  %v678_v5 = vadd.f32 %v662_v62, %v646_v1  ;;  %v624_v6 = vpack.c.bf16 %v608_v2, %v608_v2  ;;  %v592_v7 = vadd.f32 %v1270_v24, %v591_v4 }
 0x166   : > { %v659_v4 = vunpack.c.l.bf16 %v1256_v40 }
 0x167   : > { %719 = vst [vmem:[%s1280_s16 + $0x18] sm:$0xff] %v703_v57  ;;  %v694_v9 = vpack.c.bf16 %v678_v5, %v678_v5  ;;  %v640_v30 = vunpack.c.l.bf16 %v624_v6  ;;  %v615_v11 = vmax.f32 %v592_v7, 0.0 }
 0x168   : > { %v576_v12 = vpop.f32.mrf.mxu1 }
 0x169   : > { %v710_v63 = vunpack.c.l.bf16 %v694_v9  ;;  %v672_v13 = vadd.f32 %v656_v8, %v640_v30  ;;  %v631_v14 = vpack.c.bf16 %v615_v11, %v615_v11  ;;  %v577_v16 = vadd.f32 %v1270_v24, %v576_v12 }
 0x16a   : > { %v666_v9 = vunpack.c.l.bf16 %v1261_v47  ;;  %v667_v47 = vunpack.c.l.bf16 %v1263_v50 }
 0x16b   : > { %726 = vst [vmem:[%s1280_s16 + $0x50] sm:$0xff] %v710_v63  ;;  %v688_v18 = vpack.c.bf16 %v672_v13, %v672_v13  ;;  %v647_v19 = vunpack.c.l.bf16 %v631_v14  ;;  %v609_v20 = vmax.f32 %v577_v16, 0.0 }
 0x16c   : > { %v594_v22 = vpop.f32.mrf.mxu3 }
 0x16d   : > { %v704_v10 = vunpack.c.l.bf16 %v688_v18  ;;  %v679_v35 = vadd.f32 %v663_v17, %v647_v19  ;;  %v625_v23 = vpack.c.bf16 %v609_v20, %v609_v20  ;;  %v595_v25 = vadd.f32 %v1270_v24, %v594_v22 }
 0x16f   : > { %720 = vst [vmem:[%s1280_s16 + $0x20] sm:$0xff] %v704_v10  ;;  %v695_v28 = vpack.c.bf16 %v679_v35, %v679_v35  ;;  %v641_v29 = vunpack.c.l.bf16 %v625_v23  ;;  %v616_v31 = vmax.f32 %v595_v25, 0.0 }
 0x170   : > { %v579_v32 = vpop.f32.mrf.mxu1 }
 0x171   : > { %v711_v3 = vunpack.c.l.bf16 %v695_v28  ;;  %v673_v33 = vadd.f32 %v657_v27, %v641_v29  ;;  %v632_v36 = vpack.c.bf16 %v616_v31, %v616_v31  ;;  %v580_v41 = vadd.f32 %v1270_v24, %v579_v32 }
 0x173   : > { %727 = vst [vmem:[%s1280_s16 + $0x58] sm:$0xff] %v711_v3  ;;  %v689_v38 = vpack.c.bf16 %v673_v33, %v673_v33  ;;  %v648_v39 = vunpack.c.l.bf16 %v632_v36  ;;  %v610_v42 = vmax.f32 %v580_v41, 0.0 }
 0x174   : > { %v596_v43 = vpop.f32.mrf.mxu3 }
 0x175   : > { %v705_v15 = vunpack.c.l.bf16 %v689_v38  ;;  %v680_v44 = vadd.f32 %v664_v37, %v648_v39  ;;  %v626_v46 = vpack.c.bf16 %v610_v42, %v610_v42  ;;  %v597_v52 = vadd.f32 %v1270_v24, %v596_v43 }
 0x177   : > { %721 = vst [vmem:[%s1280_s16 + $0x28] sm:$0xff] %v705_v15  ;;  %v696_v49 = vpack.c.bf16 %v680_v44, %v680_v44  ;;  %v642_v51 = vunpack.c.l.bf16 %v626_v46  ;;  %v617_v53 = vmax.f32 %v597_v52, 0.0 }
 0x178   : > { %v581_v54 = vpop.f32.mrf.mxu1 }
 0x179   : > { %v712_v21 = vunpack.c.l.bf16 %v696_v49  ;;  %v674_v55 = vadd.f32 %v658_v48, %v642_v51  ;;  %v633_v56 = vpack.c.bf16 %v617_v53, %v617_v53  ;;  %v582_v58 = vadd.f32 %v1270_v24, %v581_v54 }
 0x17b   : > { %728 = vst [vmem:[%s1280_s16 + $0x60] sm:$0xff] %v712_v21  ;;  %v690_v59 = vpack.c.bf16 %v674_v55, %v674_v55  ;;  %v649_v60 = vunpack.c.l.bf16 %v633_v56  ;;  %v611_v61 = vmax.f32 %v582_v58, 0.0 }
 0x17c   : > { %v599_v62 = vpop.f32.mrf.mxu3 }
 0x17d   : > { %v706_v34 = vunpack.c.l.bf16 %v690_v59  ;;  %v681_v0 = vadd.f32 %v665_v45, %v649_v60  ;;  %v627_v1 = vpack.c.bf16 %v611_v61, %v611_v61  ;;  %v600_v2 = vadd.f32 %v1270_v24, %v599_v62 }
 0x17f   : > { %722 = vst [vmem:[%s1280_s16 + $0x30] sm:$0xff] %v706_v34  ;;  %v697_v57 = vpack.c.bf16 %v681_v0, %v681_v0  ;;  %v643_v5 = vunpack.c.l.bf16 %v627_v1  ;;  %v618_v6 = vmax.f32 %v600_v2, 0.0 }
 0x181   : > { %v713_v26 = vunpack.c.l.bf16 %v697_v57  ;;  %v675_v7 = vadd.f32 %v659_v4, %v643_v5  ;;  %v634_v8 = vpack.c.bf16 %v618_v6, %v618_v6 }
 0x183   : > { %729 = vst [vmem:[%s1280_s16 + $0x68] sm:$0xff] %v713_v26  ;;  %v691_v30 = vpack.c.bf16 %v675_v7, %v675_v7  ;;  %v650_v11 = vunpack.c.l.bf16 %v634_v8 }
 0x184   : > { %v601_v12 = vpop.f32.mrf.mxu3 }
 0x185   : > { %v707_v63 = vunpack.c.l.bf16 %v691_v30  ;;  %v682_v13 = vadd.f32 %v666_v9, %v650_v11  ;;  %v602_v40 = vadd.f32 %v1270_v24, %v601_v12 }
 0x187   : > { %723 = vst [vmem:[%s1280_s16 + $0x38] sm:$0xff] %v707_v63  ;;  %v698_v14 = vpack.c.bf16 %v682_v13, %v682_v13  ;;  %v619_v16 = vmax.f32 %v602_v40, 0.0 }
 0x189   : > { %v714_v17 = vunpack.c.l.bf16 %v698_v14  ;;  %v635_v18 = vpack.c.bf16 %v619_v16, %v619_v16 }
 0x18b   : > { %730 = vst [vmem:[%s1280_s16 + $0x70] sm:$0xff] %v714_v17  ;;  %v651_v19 = vunpack.c.l.bf16 %v635_v18 }
 0x18d   : > { %v683_v20 = vadd.f32 %v667_v47, %v651_v19 }
 0x18f   : > { %v699_v24 = vpack.c.bf16 %v683_v20, %v683_v20 }
 0x191   : > { %v715_v22 = vunpack.c.l.bf16 %v699_v24 }
 0x193   : > { %731 = vst [vmem:[%s1280_s16 + $0x78] sm:$0xff] %v715_v22 }
 0x194   : > { %1029 = shalt.err (!%p1026_p3)
}
 0x195   : > { %s1066_s14 = smov 128   ;;  %s1067_s15 = smov 8  }
 0x196   : > { %959 = dma.vmem_to_hbm [thread:$0]  (%p1136_p5), %s746_s30, 2048, %s748_s6, %s733_s22, %s1066_s14, %s1066_s14, %s1067_s15  }
 0x197 PF: > { %p965_p4 = scmp.ge.s32.totalorder %s1064_s21, 2  ;;  %s762_s16 = sand.u32 1, %s1052_s18  }
 0x198   : > { %s763_s17 = scalar_lea.sflag [#allocation3], %s762_s16 }
 0x199   : > { %p962_p7 = pnand %p965_p4, %p1140_p6 }
 0x19b   : > { %p963_p8 = pneg %p962_p7 }
 0x19d   : > { %1047 = dma.done.wait (%p963_p8), %s763_s17, 2048  }
 0x19e   : > { %1049 = vsyncadd (%p963_p8), %s763_s17, 4294965248  ;;  %p15_p9 = scmp.ge.s32.totalorder %s1123_s24, 4   ;;  %s1367_s18 = smov %s1056_s19 }
 0x19f   : > { %s1368_s19 = smov %s1060_s20  ;;  %s1369_s20 = smov %s1134_s27 }
 0x1a0   : > { %s1370_s21 = smov %s1123_s24  ;;  %17 = sbr.rel (!%p15_p9) target bundleno = 3 (0x3), region = 75 }
 0x1a5   :  { %769 = vsyncpa [#allocation3], 1 }
 0x1a6   :  { %771 = vsyncpa [#allocation3 + $0x1], 1 }

</bundles_post_ra>
